<compile_context>
chip_gen: v7x
topology: tpu7x:2x2x1
jax: 0.10.0
libtpu: 0.0.40
codegen_flags: <defaults>
</compile_context>

<pallas_src>
import functools
import math

import jax
import jax.numpy as jnp
from jax.experimental import pallas as pl
from jax.experimental.pallas import tpu as pltpu


def _gem_pool_kernel(w_ref, x_ref, o_ref, *, p, pool_size, eps):
    """One (TR, W) row tile.  W = G * L; each row holds G independent
    length-L segments.  w_ref[tap, lane] already encodes segment-boundary
    validity (kills wraparound / cross-segment taps) and the 1/count factor."""
    x = x_ref[...]                                   # (TR, W)
    w = w_ref[...]                                   # (pool_size, W), resident
    pad = pool_size // 2

    y = jnp.maximum(x, eps) ** p                     # clamp + integer_pow (VPU)

    acc = y * w[pad:pad + 1]                         # center tap
    for t in range(pool_size):
        if t == pad:
            continue
        off = t - pad                                # tap offset in [-pad, pad]
        # shifted[l] = y[(l + off) % W]; invalid (wraparound / neighbouring
        # segment) taps are multiplied by zero weight below.
        shifted = jnp.roll(y, -off, axis=-1)
        acc = acc + shifted * w[t:t + 1]

    out = acc ** (1.0 / p) - x                       # fractional pow (EUP)
    o_ref[...] = out.astype(o_ref.dtype)


def gem_pool(x, *, p=3, pool_size=3, eps=1e-05):
    """x: (N, C, L) float. Returns GeMPool(x) with the same shape/dtype."""
    assert eps > 0, "eps must be > 0 (fractional pow needs positive pooled x)"
    # TODO(synk): even pool_size changes torch AvgPool1d's output length (L+1);
    # only the module's odd-window configuration is implemented.
    assert pool_size % 2 == 1, "only odd pool_size supported"

    if isinstance(p, float) and p.is_integer():
        p = int(p)                        # keep x**p as integer_pow on the VPU

    N, C, L = x.shape
    R = N * C

    # Pack G consecutive independent rows side-by-side so lane width W = G*L
    # is a multiple of 128 (pure row-major reshape, no transpose / data move).
    g = 128 // math.gcd(L, 128)
    if R % g != 0:
        g = 1                             # correctness fallback, less lane-dense
    W = g * L
    Rp = R // g
    x2 = x.reshape(Rp, W)

    # Per-lane tap weights: tap validity inside its length-L segment divided
    # by the number of valid taps (count_include_pad=False).
    pad = pool_size // 2
    lane = jnp.arange(W, dtype=jnp.int32) % L
    offs = jnp.arange(pool_size, dtype=jnp.int32)[:, None] - pad
    valid = (lane[None, :] + offs >= 0) & (lane[None, :] + offs < L)
    count = jnp.sum(valid, axis=0)
    weights = valid.astype(jnp.float32) / count.astype(jnp.float32)[None, :]

    # Row-tile size: ~2 MiB per buffer, sublane-aligned (multiple of 8) or
    # equal to the full row count.
    itemsize = x.dtype.itemsize
    tr = max((2 * 1024 * 1024) // (W * itemsize), 8)
    tr = min(tr, Rp)
    if tr < Rp:
        tr = (tr // 8) * 8
    grid = ((Rp + tr - 1) // tr,)

    kernel = functools.partial(_gem_pool_kernel, p=p, pool_size=pool_size,
                               eps=eps)
    out2 = pl.pallas_call(
        kernel,
        out_shape=jax.ShapeDtypeStruct((Rp, W), x.dtype),
        grid=grid,
        in_specs=[
            pl.BlockSpec((pool_size, W), lambda i: (0, 0)),  # resident weights
            pl.BlockSpec((tr, W), lambda i: (i, 0)),
        ],
        out_specs=pl.BlockSpec((tr, W), lambda i: (i, 0)),
        compiler_params=pltpu.CompilerParams(
            dimension_semantics=("parallel",),
            vmem_limit_bytes=32 * 1024 * 1024),
    )(weights, x2)
    return out2.reshape(N, C, L)


def gem_pool_ref(x, *, p=3, pool_size=3, eps=1e-05):
    """Pure-JAX reference (mirrors torch AvgPool1d count_include_pad=False)."""
    N, C, L = x.shape
    y = jnp.maximum(x, eps) ** p
    pad = pool_size // 2
    yp = jnp.pad(y, ((0, 0), (0, 0), (pad, pad)))
    s = sum(yp[:, :, k:k + L] for k in range(pool_size))
    idx = jnp.arange(L)
    lo = jnp.maximum(idx - pad, 0)
    hi = jnp.minimum(idx + (pool_size - 1 - pad), L - 1)
    count = (hi - lo + 1).astype(x.dtype)
    pooled = s / count
    return pooled ** (1.0 / p) - x


if __name__ == "__main__":
    key = jax.random.PRNGKey(0)
    # (2, 4, 16): packed path (G=8, W=128, lane-dense, 8 segments per row).
    # (2, 4, 48): packed path (G=8, W=384, segment boundaries mid-vreg).
    # (2, 4, 128): unpacked path (G=1, W=128).
    for (n, c, l) in [(2, 4, 16), (2, 4, 48), (2, 4, 128)]:
        key, sub = jax.random.split(key)
        x = jax.random.normal(sub, (n, c, l), dtype=jnp.float32)

        out = jax.block_until_ready(gem_pool(x))
        ref = gem_pool_ref(x)

        assert out.shape == (n, c, l)
        err = float(jnp.max(jnp.abs(out - ref)))
        assert jnp.allclose(out, ref, atol=1e-4, rtol=1e-4), (
            f"shape {(n, c, l)}: max err {err}")
    print("KERNEL_OK")
</pallas_src>

<mosaic_0001>
module attributes {stable_mosaic.version = 11 : i64} {
  func.func @_gem_pool_kernel(%arg0: i32, %arg1: memref<3x128xf32, #tpu.memory_space<vmem>>, %arg2: memref<1x128xf32, #tpu.memory_space<vmem>>, %arg3: memref<1x128xf32, #tpu.memory_space<vmem>>) attributes {dimension_semantics = [#tpu.dimension_semantics<parallel>], iteration_bounds = array<i64: 1>, scalar_prefetch = 0 : i64, scratch_operands = 0 : i64, tpu.core_type = #tpu.core_type<tc>, window_params = [{pipeline_mode = #tpu.pipeline_mode<synchronous>, transform_indices = @transform_0, window_bounds = array<i64: 3, 128>}, {transform_indices = @transform_1, window_bounds = array<i64: 1, 128>}, {transform_indices = @transform_2, window_bounds = array<i64: 1, 128>}]} {
    %c0 = arith.constant 0 : index
    %c0_0 = arith.constant 0 : index
    %0 = vector.load %arg2[%c0, %c0_0] : memref<1x128xf32, #tpu.memory_space<vmem>>, vector<1x128xf32>
    %c0_1 = arith.constant 0 : index
    %c0_2 = arith.constant 0 : index
    %1 = vector.load %arg1[%c0_1, %c0_2] : memref<3x128xf32, #tpu.memory_space<vmem>>, vector<3x128xf32>
    %cst = arith.constant 9.99999974E-6 : f32
    %2 = vector.broadcast %cst : f32 to vector<1x128xf32>
    %3 = arith.maximumf %0, %2 : vector<1x128xf32>
    %4 = arith.mulf %3, %3 : vector<1x128xf32>
    %5 = arith.mulf %3, %4 : vector<1x128xf32>
    %6 = vector.extract_strided_slice %1 {offsets = [1, 0], sizes = [1, 128], strides = [1, 1]} : vector<3x128xf32> to vector<1x128xf32>
    %7 = arith.mulf %5, %6 : vector<1x128xf32>
    %8 = vector.extract_strided_slice %5 {offsets = [0, 127], sizes = [1, 1], strides = [1, 1]} : vector<1x128xf32> to vector<1x1xf32>
    %9 = vector.extract_strided_slice %5 {offsets = [0, 0], sizes = [1, 127], strides = [1, 1]} : vector<1x128xf32> to vector<1x127xf32>
    %10 = tpu.concatenate %8, %9 in 1 : vector<1x1xf32>, vector<1x127xf32> -> vector<1x128xf32>
    %11 = vector.extract_strided_slice %1 {offsets = [0, 0], sizes = [1, 128], strides = [1, 1]} : vector<3x128xf32> to vector<1x128xf32>
    %12 = arith.mulf %10, %11 : vector<1x128xf32>
    %13 = arith.addf %7, %12 : vector<1x128xf32>
    %14 = vector.extract_strided_slice %5 {offsets = [0, 1], sizes = [1, 127], strides = [1, 1]} : vector<1x128xf32> to vector<1x127xf32>
    %15 = vector.extract_strided_slice %5 {offsets = [0, 0], sizes = [1, 1], strides = [1, 1]} : vector<1x128xf32> to vector<1x1xf32>
    %16 = tpu.concatenate %14, %15 in 1 : vector<1x127xf32>, vector<1x1xf32> -> vector<1x128xf32>
    %17 = vector.extract_strided_slice %1 {offsets = [2, 0], sizes = [1, 128], strides = [1, 1]} : vector<3x128xf32> to vector<1x128xf32>
    %18 = arith.mulf %16, %17 : vector<1x128xf32>
    %19 = arith.addf %13, %18 : vector<1x128xf32>
    %cst_3 = arith.constant 0.333333343 : f32
    %20 = vector.broadcast %cst_3 : f32 to vector<1x128xf32>
    %21 = math.powf %19, %20 : vector<1x128xf32>
    %22 = arith.subf %21, %0 : vector<1x128xf32>
    %c0_4 = arith.constant 0 : index
    %c0_5 = arith.constant 0 : index
    %23 = vector.load %arg3[%c0_4, %c0_5] : memref<1x128xf32, #tpu.memory_space<vmem>>, vector<1x128xf32>
    tpu.vector_store %arg3[%c0_4, %c0_5], %22 {strides = array<i32>} : memref<1x128xf32, #tpu.memory_space<vmem>>, vector<1x128xf32>,
    return
  }
  func.func @transform_0(%arg0: i32) -> (i32, i32) {
    %c0_i32 = arith.constant 0 : i32
    %c0_i32_0 = arith.constant 0 : i32
    %c0_i32_1 = arith.constant 0 : i32
    return %c0_i32, %c0_i32_0 : i32, i32
  }
  func.func @transform_1(%arg0: i32) -> (i32, i32) {
    %c0_i32 = arith.constant 0 : i32
    %c0_i32_0 = arith.constant 0 : i32
    return %arg0, %c0_i32 : i32, i32
  }
  func.func @transform_2(%arg0: i32) -> (i32, i32) {
    %c0_i32 = arith.constant 0 : i32
    %c0_i32_0 = arith.constant 0 : i32
    return %arg0, %c0_i32 : i32, i32
  }
}

</mosaic_0001>

<bundles_post_ra>
// kernel: tpu_custom_call.1
= control target key start
LH: loop header
LB: loop body
LE: loop exit
PB: predicated region body
PF: predicated region fallthrough
CT: control target
= control target key end

     0   :  { %7 = vsyncpa [#allocation3], 0  ;;  %s204_s0 = inlined_call_operand.hbm [shape: f32[3,128], index: 0, kind: input, shape index: {}]   ;;  %s205_s1 = inlined_call_operand.vmem [shape: f32[1,128], index: 1, kind: input, shape index: {}]   ;;  %s206_s2 = inlined_call_operand.hbm [shape: f32[1,128], index: 2, kind: output, shape index: {}]  }
   0x1   :  { %8 = vsyncpa [#allocation4], 0  ;;  %s157_s9 = smov [#allocation2]   ;;  %s109_s13 = scalar_lea.hbm %s204_s0, 64 }
   0x2   :  { %s15_s10 = sshll.u32 %s157_s9, 4  ;;  %p110_p0 = scmp.ne.s32.totalorder %s204_s0, %s109_s13  ;;  %s16_s10 = int_to_ptr.vmem [resolvable:$true] %s15_s10 }
   0x3   :  { %p113_p1 = scmp.lt.u32.totalorder %s109_s13, %s204_s0 }
   0x5   :  { %p115_p2 = pnand %p113_p1, %p110_p0 }
   0x7   :  { %118 = shalt.err (!%p115_p2)
}
   0x8   :  { %s119_s18 = scalar_lea.vmem %s16_s10, 64  ;;  %p124_p4 = scmp.lt.s32.totalorder %s16_s10, %s16_s10 }
   0x9   :  { %p120_p3 = scmp.ne.s32.totalorder %s16_s10, %s119_s18  ;;  %p125_p5 = scmp.lt.s32.totalorder %s119_s18, %s119_s18 }
   0xb   :  { %p126_p6 = por %p125_p5, %p124_p4 }
   0xd   :  { %p127_p7 = pnand %p126_p6, %p120_p3 }
   0xf   :  { %130 = shalt.err (!%p127_p7)
}
  0x10   :  { %18 = dma.hbm_to_vmem [thread:$0]  %s204_s0, 64, %s16_s10, [#allocation3]  }
  0x11   :  { %153 = dma.done.wait [#allocation3], 64  }
  0x12   :  { %154 = vsyncadd [#allocation3], 4294967232  ;;  %v33_v0 = vlaneseq  ;;  %v158_v1 = vmov 1966171168   ;;  %v24_v6 = vld [vmem:[%s205_s1] sm:$0x1] }
  0x13   :  { %v31_v2 = vunpack.c.l.s4 %v158_v1  ;;  %v25_v7 = vld [vmem:[#allocation2] sm:$0x7]  ;;  %v26_v8 = vmax.f32 %v24_v6, 1e-05  ;;  %s159_s0 = smov 1   ;;  %s160_s23 = smov 127  }
  0x14   :  { %v34_v3 = vshrl.u32 %v33_v0, 7  ;;  %v60_v19 = vrot.slane %v25_v7, 2  ;;  %s161_s1 = smov [#allocation5]  }
  0x15   :  { %v32_v4 = vunpack.c.0.s8 %v31_v2  ;;  %v27_v10 = vmul.f32 %v26_v8, %v26_v8  ;;  %s73_s24 = sshll.u32 %s161_s1, 4  ;;  %s74_s24 = int_to_ptr.vmem [resolvable:$true] %s73_s24 }
  0x16   :  { %v50_v11 = vsub.s32 0, %v34_v3  ;;  %s131_s25 = scalar_lea.vmem %s74_s24, 16  ;;  %s135_s26 = scalar_lea.vmem %s74_s24, 32 }
  0x17   :  { %v35_v5 = vsub.s32 %v32_v4, %v34_v3  ;;  %v28_v13 = vmul.f32 %v27_v10, %v26_v8  ;;  %p132_p8 = scmp.ne.s32.totalorder %s74_s24, %s131_s25  ;;  %p136_p9 = scmp.lt.s32.totalorder %s74_s24, %s74_s24 }
  0x18   :  { %p137_p10 = scmp.lt.s32.totalorder %s135_s26, %s131_s25 }
  0x19   :  { %v36_v9 = vrot.slane %v25_v7, %v35_v5  ;;  %v51_v15 = vrot.slane %v28_v13, %v50_v11 }
  0x1a   :  { %p138_p11 = por %p137_p10, %p136_p9 }
  0x1b   :  { %v37_v12 = vcombine.high %v36_v9, %v36_v9  ;;  %52 = vrot.lane.b32.xlu0 %v51_v15, %s159_s0 }
  0x1c   :  { %p139_p12 = pnand %p138_p11, %p132_p8 }
  0x1d   :  { %v44_v14 = vrot.slane %v37_v12, %v35_v5 }
  0x1f   :  { %v46_v16 = vmul.f32 %v44_v14, %v28_v13  ;;  %57 = vrot.lane.b32.xlu0 %v51_v15, %s160_s23 }
  0x8d   :  { %v53_v17 = vpop.permute.xlu0 %52 }
  0x8e   :  { %v55_v18 = vmul.f32 %v53_v17, %v25_v7 }
  0x90   :  { %v56_v21 = vadd.f32 %v55_v18, %v46_v16 }
  0x91   :  { %v58_v20 = vpop.permute.xlu0 %57 }
  0x92   :  { %v62_v22 = vmul.f32 %v60_v19, %v58_v20 }
  0x94   :  { %v63_v23 = vadd.f32 %v62_v22, %v56_v21 }
  0x96   :  { %v84_v24 = vand.u32 2147483647, %v63_v23  ;;  %v88_v27 = vand.u32 2147483648, %v63_v23  ;;  %vm83_vm2 = vcmp.lt.f32.partialorder %v63_v23, 0.0  ;;  %vm82_vm3 = vcmp.eq.f32.partialorder %v63_v23, 0.0 }
  0x98   :  { %105 = vlog2.f32 %v84_v24  ;;  %vm92_vm0 = vweird.f32 %v84_v24  ;;  %vm94_vm1 = vcmp.eq.f32.partialorder %v84_v24, 0.0  ;;  %vm85_vm4 = vcmp.eq.f32.partialorder %v84_v24, inf }
  0xa2   :  { %v106_v25 = vpop.eup %105 }
  0xa3   :  { %v89_v26 = vmul.f32 0.33333334, %v106_v25 }
  0xa5   :  { %107 = vpow2.f32 %v89_v26 }
  0xaf   :  { %v108_v28 = vpop.eup %107 }
  0xb0   :  { %v91_v29 = vor.u32 %v108_v28, %v88_v27 }
  0xb2   :  { %v93_v30 = vsel %vm92_vm0, %v63_v23, %v91_v29 }
  0xb3   :  { %v96_v31 = vsel %vm94_vm1, %v88_v27, %v93_v30 }
  0xb4   :  { %v97_v32 = vsel %vm83_vm2, nan, %v96_v31 }
  0xb5   :  { %v98_v33 = vsel %vm82_vm3, 0.0, %v97_v32 }
  0xb6   :  { %v99_v34 = vsel %vm85_vm4, inf, %v98_v33 }
  0xb7   :  { %v65_v35 = vsub.f32 %v99_v34, %v24_v6 }
  0xb9   :  { %66 = vst [vmem:[#allocation5] sm:$0x1] %v65_v35 }
  0xba   :  { %142 = shalt.err (!%p139_p12)
}
  0xbb   :  { %s143_s29 = scalar_lea.hbm %s206_s2, 16 }
  0xbc   :  { %p144_p13 = scmp.ne.s32.totalorder %s206_s2, %s143_s29  ;;  %p147_p0 = scmp.lt.u32.totalorder %s143_s29, %s206_s2 }
  0xbe   :  { %p149_p1 = pnand %p147_p0, %p144_p13 }
  0xc0   :  { %152 = shalt.err (!%p149_p1)
}
  0xc1   :  { %76 = dma.vmem_to_hbm [thread:$0]  %s74_s24, 16, %s206_s2, [#allocation4]  }
  0xc2   :  { %155 = dma.done.wait [#allocation4], 16  }
  0xc3   :  { %156 = vsyncadd [#allocation4], 4294967280 }
  0xc4   :  { %80 = vsyncpa [#allocation3], 1 }
  0xc5   :  { %81 = vsyncpa [#allocation4], 1 }

</bundles_post_ra>
